<compile_context>
chip_gen: v7x
topology: tpu7x:2x2x1
jax: 0.10.0
libtpu: 0.0.40
codegen_flags: <defaults>
</compile_context>

<pallas_src>
import functools

import jax
import jax.numpy as jnp
import numpy as np
from jax.experimental import pallas as pl
from jax.experimental.pallas import tpu as pltpu


def sepconv_kernel(x_ref, wdw_ref, wpw_ref, bias_ref, masks_ref, o_ref, *,
                   H, W, NB, activation, use_mxu):
    """One batch block: x (NB, Cin, H*W) bf16 -> out (NB, Cout, H*W) bf16."""
    Cin = x_ref.shape[1]
    Cout = o_ref.shape[1]
    HW = H * W

    wdw = wdw_ref[...]                 # (Cin, 9)   f32 depthwise taps, row-major (kh, kw)
    masks = masks_ref[...]             # (9, HW)    f32 {0,1} border masks (grid-invariant)
    wpw = wpw_ref[...]                 # (Cout, Cin) f32 BN-folded pointwise weights
    bias = bias_ref[...]               # (Cout, 1)   f32 BN-folded bias

    # Upcast the bf16 HBM tiles to f32 once; all elementwise work stays f32 (v5e-safe).
    xs = [x_ref[b].astype(jnp.float32) for b in range(NB)]        # each (Cin, HW)
    accs = [jnp.zeros((Cin, HW), jnp.float32) for _ in range(NB)]

    # ---- depthwise 3x3, "same" padding: 9 lane-rolled (XLU), mask-weighted MACs ----
    for kh in range(3):
        dy = kh - 1
        for kw in range(3):
            dx = kw - 1
            tap = kh * 3 + kw
            s = dy * W + dx            # flat-index offset of this tap
            # Fold the {0,1} border mask into the per-channel tap weight once per
            # grid step (shared by all NB images) -> per image just mul+add per elem.
            w_col = wdw[:, tap:tap + 1]                            # (Cin, 1)
            if dy == 0 and dx == 0:
                wmask = w_col                                      # center tap: no mask
            else:
                wmask = w_col * masks[tap:tap + 1, :]              # (Cin, HW)
            for b in range(NB):
                if s == 0:
                    shifted = xs[b]
                else:
                    # shifted[p] = x[p + s] (cyclic; wrapped entries carry weight 0)
                    shifted = pltpu.roll(xs[b], (-s) % HW, axis=1)
                accs[b] = accs[b] + wmask * shifted

    # ---- pointwise 1x1 conv with BatchNorm folded in ----
    for b in range(NB):
        acc = accs[b]
        if use_mxu:
            # Explicit bf16 operands -> guaranteed single-pass MXU matmul, f32 accumulate.
            y = jnp.dot(wpw.astype(jnp.bfloat16), acc.astype(jnp.bfloat16),
                        preferred_element_type=jnp.float32)        # (Cout, HW)
        else:
            # Small channel counts: an (8,8)x(8,HW) matmul is MXU latency-dominated;
            # do Cin broadcast-MACs on the VPU instead.
            y = jnp.zeros((Cout, HW), jnp.float32)
            for c in range(Cin):
                y = y + wpw[:, c:c + 1] * acc[c:c + 1, :]
        y = y + bias                     # (Cout, 1) broadcasts across lanes
        if activation:                   # MemoryEfficientSwish: x * sigmoid(x)
            y = y * jax.nn.sigmoid(y)
        o_ref[b] = y.astype(o_ref.dtype)


@functools.partial(jax.jit, static_argnames=("activation", "use_mxu"))
def sepconv_forward(x, params, activation=False, use_mxu=None):
    """x: (N, Cin, H, W) NCHW.  Returns (N, Cout, H, W) in bf16 (values match the
    PyTorch eval-mode forward within bf16 rounding)."""
    wdw, wpw, bpw, gamma, beta, rmean, rvar = params
    eps = 1e-3                                            # nn.BatchNorm2d(eps=0.001)
    N, Cin, H, W = x.shape
    Cout = wpw.shape[0]
    HW = H * W

    if use_mxu is None:
        # Tiny channel counts are MXU latency-dominated -> VPU broadcast-MAC path.
        use_mxu = max(Cin, Cout) >= 64

    # Batch-block size: amortize per-grid-step overhead with several images per step
    # while keeping the double-buffered bf16 tiles tiny.  NB must divide N.
    NB = 1
    for cand in range(2, min(N, 8) + 1):
        if N % cand == 0 and cand * HW * (Cin + Cout) * 2 <= (2 << 20):
            NB = cand

    # NCHW -> (N, C, H*W): contiguous reshape (no transpose); bf16 across HBM/DMA.
    # (In production the upstream layer should already emit bf16 activations.)
    x2 = x.reshape(N, Cin, HW).astype(jnp.bfloat16)

    # Depthwise weights (Cin, 1, 3, 3) -> (Cin, 9), row-major taps (tiny; kept f32).
    wdw2 = wdw.reshape(Cin, 9).astype(jnp.float32)

    # Fold inference-mode BatchNorm into the pointwise conv weights/bias.
    # TODO(synk): training-mode BN (batch statistics + running-stat update) is not
    # computed in-kernel; this implements the eval-mode forward.
    scale = gamma / jnp.sqrt(rvar + eps)                               # (Cout,)
    wpw_f = (wpw[:, :, 0, 0] * scale[:, None]).astype(jnp.float32)     # (Cout, Cin)
    bias_f = (scale * (bpw - rmean) + beta).reshape(Cout, 1).astype(jnp.float32)

    # Grid-invariant {0,1} border masks for the 9 taps over the flattened H*W axis.
    # Built from static H, W -> constant-folded by XLA; DMA'd once (constant index_map).
    row = jnp.arange(HW, dtype=jnp.int32) // W
    col = jnp.arange(HW, dtype=jnp.int32) % W
    mask_rows = []
    for dy in (-1, 0, 1):
        for dx in (-1, 0, 1):
            ok = ((row + dy >= 0) & (row + dy <= H - 1) &
                  (col + dx >= 0) & (col + dx <= W - 1))
            mask_rows.append(ok.astype(jnp.float32))
    masks = jnp.stack(mask_rows)                                       # (9, HW)

    out = pl.pallas_call(
        functools.partial(sepconv_kernel, H=H, W=W, NB=NB,
                          activation=activation, use_mxu=use_mxu),
        grid=(N // NB,),
        in_specs=[
            pl.BlockSpec((NB, Cin, HW), lambda n: (n, 0, 0)),
            pl.BlockSpec((Cin, 9), lambda n: (0, 0)),
            pl.BlockSpec((Cout, Cin), lambda n: (0, 0)),
            pl.BlockSpec((Cout, 1), lambda n: (0, 0)),
            pl.BlockSpec((9, HW), lambda n: (0, 0)),
        ],
        out_specs=pl.BlockSpec((NB, Cout, HW), lambda n: (n, 0, 0)),
        out_shape=jax.ShapeDtypeStruct((N, Cout, HW), jnp.bfloat16),
        compiler_params=pltpu.CompilerParams(dimension_semantics=("parallel",)),
    )(x2, wdw2, wpw_f, bias_f, masks)

    return out.reshape(N, Cout, H, W)


def reference_forward(x, params, activation=False):
    """Pure-JAX reference mirroring the PyTorch SeparableConvBlock (eval mode, NCHW)."""
    wdw, wpw, bpw, gamma, beta, rmean, rvar = params
    eps = 1e-3
    Cin = x.shape[1]
    dn = ("NCHW", "OIHW", "NCHW")
    # depthwise 3x3, static "same" padding (k=3, s=1 -> pad 1 each side), no bias
    y = jax.lax.conv_general_dilated(x, wdw, (1, 1), ((1, 1), (1, 1)),
                                     dimension_numbers=dn, feature_group_count=Cin)
    # pointwise 1x1 conv + bias
    y = jax.lax.conv_general_dilated(y, wpw, (1, 1), "VALID", dimension_numbers=dn)
    y = y + bpw[None, :, None, None]
    # BatchNorm2d (eval mode)
    y = (y - rmean[None, :, None, None]) / jnp.sqrt(rvar[None, :, None, None] + eps)
    y = y * gamma[None, :, None, None] + beta[None, :, None, None]
    if activation:
        y = y * jax.nn.sigmoid(y)
    return y


if __name__ == "__main__":
    # Small deterministic example: in_channels = out_channels = 8, 16x16 spatial.
    N, Cin, Cout, H, W = 2, 8, 8, 16, 16

    key = jax.random.PRNGKey(0)
    ks = jax.random.split(key, 8)
    x = jax.random.normal(ks[0], (N, Cin, H, W), jnp.float32)

    wdw = 0.2 * jax.random.normal(ks[1], (Cin, 1, 3, 3), jnp.float32)     # depthwise, no bias
    wpw = 0.2 * jax.random.normal(ks[2], (Cout, Cin, 1, 1), jnp.float32)  # pointwise
    bpw = 0.1 * jax.random.normal(ks[3], (Cout,), jnp.float32)
    gamma = 1.0 + 0.1 * jax.random.normal(ks[4], (Cout,), jnp.float32)    # BN weight
    beta = 0.1 * jax.random.normal(ks[5], (Cout,), jnp.float32)           # BN bias
    rmean = 0.1 * jax.random.normal(ks[6], (Cout,), jnp.float32)          # BN running_mean
    rvar = 0.5 + jax.random.uniform(ks[7], (Cout,), jnp.float32)          # BN running_var
    params = (wdw, wpw, bpw, gamma, beta, rmean, rvar)

    ref = jax.block_until_ready(reference_forward(x, params, activation=False))
    ref_a = jax.block_until_ready(reference_forward(x, params, activation=True))

    # Default module config (norm=True, activation=False); VPU pointwise path (8 channels).
    out = jax.block_until_ready(sepconv_forward(x, params, activation=False))
    assert out.shape == (N, Cout, H, W), out.shape
    np.testing.assert_allclose(np.asarray(out.astype(jnp.float32)), np.asarray(ref),
                               rtol=2e-2, atol=2e-2)

    # Optional Swish path (activation=True).
    out_a = jax.block_until_ready(sepconv_forward(x, params, activation=True))
    np.testing.assert_allclose(np.asarray(out_a.astype(jnp.float32)), np.asarray(ref_a),
                               rtol=2e-2, atol=2e-2)

    # Also exercise the MXU pointwise path (the one used at production channel counts).
    out_m = jax.block_until_ready(sepconv_forward(x, params, activation=False,
                                                  use_mxu=True))
    np.testing.assert_allclose(np.asarray(out_m.astype(jnp.float32)), np.asarray(ref),
                               rtol=2e-2, atol=2e-2)

    print("KERNEL_OK")
</pallas_src>

<mosaic_0001>
module attributes {stable_mosaic.version = 11 : i64} {
  func.func @sepconv_kernel(%arg0: i32, %arg1: memref<2x8x256xbf16, #tpu.memory_space<vmem>>, %arg2: memref<8x9xf32, #tpu.memory_space<vmem>>, %arg3: memref<8x8xf32, #tpu.memory_space<vmem>>, %arg4: memref<8x1xf32, #tpu.memory_space<vmem>>, %arg5: memref<9x256xf32, #tpu.memory_space<vmem>>, %arg6: memref<2x8x256xbf16, #tpu.memory_space<vmem>>) attributes {dimension_semantics = [#tpu.dimension_semantics<parallel>], iteration_bounds = array<i64: 1>, scalar_prefetch = 0 : i64, scratch_operands = 0 : i64, tpu.core_type = #tpu.core_type<tc>, window_params = [{transform_indices = @transform_0, window_bounds = array<i64: 2, 8, 256>}, {pipeline_mode = #tpu.pipeline_mode<synchronous>, transform_indices = @transform_1, window_bounds = array<i64: 8, 9>}, {pipeline_mode = #tpu.pipeline_mode<synchronous>, transform_indices = @transform_2, window_bounds = array<i64: 8, 8>}, {pipeline_mode = #tpu.pipeline_mode<synchronous>, transform_indices = @transform_3, window_bounds = array<i64: 8, 1>}, {pipeline_mode = #tpu.pipeline_mode<synchronous>, transform_indices = @transform_4, window_bounds = array<i64: 9, 256>}, {transform_indices = @transform_5, window_bounds = array<i64: 2, 8, 256>}]} {
    %c0 = arith.constant 0 : index
    %c0_0 = arith.constant 0 : index
    %0 = vector.load %arg2[%c0, %c0_0] : memref<8x9xf32, #tpu.memory_space<vmem>>, vector<8x9xf32>
    %c0_1 = arith.constant 0 : index
    %c0_2 = arith.constant 0 : index
    %1 = vector.load %arg5[%c0_1, %c0_2] : memref<9x256xf32, #tpu.memory_space<vmem>>, vector<9x256xf32>
    %c0_3 = arith.constant 0 : index
    %c0_4 = arith.constant 0 : index
    %2 = vector.load %arg3[%c0_3, %c0_4] : memref<8x8xf32, #tpu.memory_space<vmem>>, vector<8x8xf32>
    %c0_5 = arith.constant 0 : index
    %c0_6 = arith.constant 0 : index
    %3 = vector.load %arg4[%c0_5, %c0_6] : memref<8x1xf32, #tpu.memory_space<vmem>>, vector<8x1xf32>
    %c0_7 = arith.constant 0 : index
    %c0_8 = arith.constant 0 : index
    %c0_9 = arith.constant 0 : index
    %4 = vector.load %arg1[%c0_7, %c0_8, %c0_9] : memref<2x8x256xbf16, #tpu.memory_space<vmem>>, vector<1x8x256xbf16>
    %5 = vector.shape_cast %4 : vector<1x8x256xbf16> to vector<8x256xbf16>
    %6 = arith.extf %5 : vector<8x256xbf16> to vector<8x256xf32>
    %c1 = arith.constant 1 : index
    %c0_10 = arith.constant 0 : index
    %c0_11 = arith.constant 0 : index
    %7 = vector.load %arg1[%c1, %c0_10, %c0_11] : memref<2x8x256xbf16, #tpu.memory_space<vmem>>, vector<1x8x256xbf16>
    %8 = vector.shape_cast %7 : vector<1x8x256xbf16> to vector<8x256xbf16>
    %9 = arith.extf %8 : vector<8x256xbf16> to vector<8x256xf32>
    %cst = arith.constant 0.000000e+00 : f32
    %10 = vector.broadcast %cst : f32 to vector<8x256xf32>
    %cst_12 = arith.constant 0.000000e+00 : f32
    %11 = vector.broadcast %cst_12 : f32 to vector<8x256xf32>
    %12 = vector.extract_strided_slice %0 {offsets = [0, 0], sizes = [8, 1], strides = [1, 1]} : vector<8x9xf32> to vector<8x1xf32>
    %13 = vector.extract_strided_slice %1 {offsets = [0, 0], sizes = [1, 256], strides = [1, 1]} : vector<9x256xf32> to vector<1x256xf32>
    %14 = vector.broadcast %12 : vector<8x1xf32> to vector<8x256xf32>
    %15 = vector.broadcast %13 : vector<1x256xf32> to vector<8x256xf32>
    %16 = arith.mulf %14, %15 : vector<8x256xf32>
    %c17_i32 = arith.constant 17 : i32
    %17 = tpu.dynamic_rotate %6 by %c17_i32 dim 1 : vector<8x256xf32>, i32 -> vector<8x256xf32>
    %18 = arith.mulf %16, %17 : vector<8x256xf32>
    %19 = arith.addf %10, %18 : vector<8x256xf32>
    %c17_i32_13 = arith.constant 17 : i32
    %20 = tpu.dynamic_rotate %9 by %c17_i32_13 dim 1 : vector<8x256xf32>, i32 -> vector<8x256xf32>
    %21 = arith.mulf %16, %20 : vector<8x256xf32>
    %22 = arith.addf %11, %21 : vector<8x256xf32>
    %23 = vector.extract_strided_slice %0 {offsets = [0, 1], sizes = [8, 1], strides = [1, 1]} : vector<8x9xf32> to vector<8x1xf32>
    %24 = vector.extract_strided_slice %1 {offsets = [1, 0], sizes = [1, 256], strides = [1, 1]} : vector<9x256xf32> to vector<1x256xf32>
    %25 = vector.broadcast %23 : vector<8x1xf32> to vector<8x256xf32>
    %26 = vector.broadcast %24 : vector<1x256xf32> to vector<8x256xf32>
    %27 = arith.mulf %25, %26 : vector<8x256xf32>
    %c16_i32 = arith.constant 16 : i32
    %28 = tpu.dynamic_rotate %6 by %c16_i32 dim 1 : vector<8x256xf32>, i32 -> vector<8x256xf32>
    %29 = arith.mulf %27, %28 : vector<8x256xf32>
    %30 = arith.addf %19, %29 : vector<8x256xf32>
    %c16_i32_14 = arith.constant 16 : i32
    %31 = tpu.dynamic_rotate %9 by %c16_i32_14 dim 1 : vector<8x256xf32>, i32 -> vector<8x256xf32>
    %32 = arith.mulf %27, %31 : vector<8x256xf32>
    %33 = arith.addf %22, %32 : vector<8x256xf32>
    %34 = vector.extract_strided_slice %0 {offsets = [0, 2], sizes = [8, 1], strides = [1, 1]} : vector<8x9xf32> to vector<8x1xf32>
    %35 = vector.extract_strided_slice %1 {offsets = [2, 0], sizes = [1, 256], strides = [1, 1]} : vector<9x256xf32> to vector<1x256xf32>
    %36 = vector.broadcast %34 : vector<8x1xf32> to vector<8x256xf32>
    %37 = vector.broadcast %35 : vector<1x256xf32> to vector<8x256xf32>
    %38 = arith.mulf %36, %37 : vector<8x256xf32>
    %c15_i32 = arith.constant 15 : i32
    %39 = tpu.dynamic_rotate %6 by %c15_i32 dim 1 : vector<8x256xf32>, i32 -> vector<8x256xf32>
    %40 = arith.mulf %38, %39 : vector<8x256xf32>
    %41 = arith.addf %30, %40 : vector<8x256xf32>
    %c15_i32_15 = arith.constant 15 : i32
    %42 = tpu.dynamic_rotate %9 by %c15_i32_15 dim 1 : vector<8x256xf32>, i32 -> vector<8x256xf32>
    %43 = arith.mulf %38, %42 : vector<8x256xf32>
    %44 = arith.addf %33, %43 : vector<8x256xf32>
    %45 = vector.extract_strided_slice %0 {offsets = [0, 3], sizes = [8, 1], strides = [1, 1]} : vector<8x9xf32> to vector<8x1xf32>
    %46 = vector.extract_strided_slice %1 {offsets = [3, 0], sizes = [1, 256], strides = [1, 1]} : vector<9x256xf32> to vector<1x256xf32>
    %47 = vector.broadcast %45 : vector<8x1xf32> to vector<8x256xf32>
    %48 = vector.broadcast %46 : vector<1x256xf32> to vector<8x256xf32>
    %49 = arith.mulf %47, %48 : vector<8x256xf32>
    %c1_i32 = arith.constant 1 : i32
    %50 = tpu.dynamic_rotate %6 by %c1_i32 dim 1 : vector<8x256xf32>, i32 -> vector<8x256xf32>
    %51 = arith.mulf %49, %50 : vector<8x256xf32>
    %52 = arith.addf %41, %51 : vector<8x256xf32>
    %c1_i32_16 = arith.constant 1 : i32
    %53 = tpu.dynamic_rotate %9 by %c1_i32_16 dim 1 : vector<8x256xf32>, i32 -> vector<8x256xf32>
    %54 = arith.mulf %49, %53 : vector<8x256xf32>
    %55 = arith.addf %44, %54 : vector<8x256xf32>
    %56 = vector.extract_strided_slice %0 {offsets = [0, 4], sizes = [8, 1], strides = [1, 1]} : vector<8x9xf32> to vector<8x1xf32>
    %57 = vector.broadcast %56 : vector<8x1xf32> to vector<8x256xf32>
    %58 = arith.mulf %57, %6 : vector<8x256xf32>
    %59 = arith.addf %52, %58 : vector<8x256xf32>
    %60 = vector.broadcast %56 : vector<8x1xf32> to vector<8x256xf32>
    %61 = arith.mulf %60, %9 : vector<8x256xf32>
    %62 = arith.addf %55, %61 : vector<8x256xf32>
    %63 = vector.extract_strided_slice %0 {offsets = [0, 5], sizes = [8, 1], strides = [1, 1]} : vector<8x9xf32> to vector<8x1xf32>
    %64 = vector.extract_strided_slice %1 {offsets = [5, 0], sizes = [1, 256], strides = [1, 1]} : vector<9x256xf32> to vector<1x256xf32>
    %65 = vector.broadcast %63 : vector<8x1xf32> to vector<8x256xf32>
    %66 = vector.broadcast %64 : vector<1x256xf32> to vector<8x256xf32>
    %67 = arith.mulf %65, %66 : vector<8x256xf32>
    %c255_i32 = arith.constant 255 : i32
    %68 = tpu.dynamic_rotate %6 by %c255_i32 dim 1 : vector<8x256xf32>, i32 -> vector<8x256xf32>
    %69 = arith.mulf %67, %68 : vector<8x256xf32>
    %70 = arith.addf %59, %69 : vector<8x256xf32>
    %c255_i32_17 = arith.constant 255 : i32
    %71 = tpu.dynamic_rotate %9 by %c255_i32_17 dim 1 : vector<8x256xf32>, i32 -> vector<8x256xf32>
    %72 = arith.mulf %67, %71 : vector<8x256xf32>
    %73 = arith.addf %62, %72 : vector<8x256xf32>
    %74 = vector.extract_strided_slice %0 {offsets = [0, 6], sizes = [8, 1], strides = [1, 1]} : vector<8x9xf32> to vector<8x1xf32>
    %75 = vector.extract_strided_slice %1 {offsets = [6, 0], sizes = [1, 256], strides = [1, 1]} : vector<9x256xf32> to vector<1x256xf32>
    %76 = vector.broadcast %74 : vector<8x1xf32> to vector<8x256xf32>
    %77 = vector.broadcast %75 : vector<1x256xf32> to vector<8x256xf32>
    %78 = arith.mulf %76, %77 : vector<8x256xf32>
    %c241_i32 = arith.constant 241 : i32
    %79 = tpu.dynamic_rotate %6 by %c241_i32 dim 1 : vector<8x256xf32>, i32 -> vector<8x256xf32>
    %80 = arith.mulf %78, %79 : vector<8x256xf32>
    %81 = arith.addf %70, %80 : vector<8x256xf32>
    %c241_i32_18 = arith.constant 241 : i32
    %82 = tpu.dynamic_rotate %9 by %c241_i32_18 dim 1 : vector<8x256xf32>, i32 -> vector<8x256xf32>
    %83 = arith.mulf %78, %82 : vector<8x256xf32>
    %84 = arith.addf %73, %83 : vector<8x256xf32>
    %85 = vector.extract_strided_slice %0 {offsets = [0, 7], sizes = [8, 1], strides = [1, 1]} : vector<8x9xf32> to vector<8x1xf32>
    %86 = vector.extract_strided_slice %1 {offsets = [7, 0], sizes = [1, 256], strides = [1, 1]} : vector<9x256xf32> to vector<1x256xf32>
    %87 = vector.broadcast %85 : vector<8x1xf32> to vector<8x256xf32>
    %88 = vector.broadcast %86 : vector<1x256xf32> to vector<8x256xf32>
    %89 = arith.mulf %87, %88 : vector<8x256xf32>
    %c240_i32 = arith.constant 240 : i32
    %90 = tpu.dynamic_rotate %6 by %c240_i32 dim 1 : vector<8x256xf32>, i32 -> vector<8x256xf32>
    %91 = arith.mulf %89, %90 : vector<8x256xf32>
    %92 = arith.addf %81, %91 : vector<8x256xf32>
    %c240_i32_19 = arith.constant 240 : i32
    %93 = tpu.dynamic_rotate %9 by %c240_i32_19 dim 1 : vector<8x256xf32>, i32 -> vector<8x256xf32>
    %94 = arith.mulf %89, %93 : vector<8x256xf32>
    %95 = arith.addf %84, %94 : vector<8x256xf32>
    %96 = vector.extract_strided_slice %0 {offsets = [0, 8], sizes = [8, 1], strides = [1, 1]} : vector<8x9xf32> to vector<8x1xf32>
    %97 = vector.extract_strided_slice %1 {offsets = [8, 0], sizes = [1, 256], strides = [1, 1]} : vector<9x256xf32> to vector<1x256xf32>
    %98 = vector.broadcast %96 : vector<8x1xf32> to vector<8x256xf32>
    %99 = vector.broadcast %97 : vector<1x256xf32> to vector<8x256xf32>
    %100 = arith.mulf %98, %99 : vector<8x256xf32>
    %c239_i32 = arith.constant 239 : i32
    %101 = tpu.dynamic_rotate %6 by %c239_i32 dim 1 : vector<8x256xf32>, i32 -> vector<8x256xf32>
    %102 = arith.mulf %100, %101 : vector<8x256xf32>
    %103 = arith.addf %92, %102 : vector<8x256xf32>
    %c239_i32_20 = arith.constant 239 : i32
    %104 = tpu.dynamic_rotate %9 by %c239_i32_20 dim 1 : vector<8x256xf32>, i32 -> vector<8x256xf32>
    %105 = arith.mulf %100, %104 : vector<8x256xf32>
    %106 = arith.addf %95, %105 : vector<8x256xf32>
    %cst_21 = arith.constant 0.000000e+00 : f32
    %107 = vector.broadcast %cst_21 : f32 to vector<8x256xf32>
    %108 = vector.extract_strided_slice %2 {offsets = [0, 0], sizes = [8, 1], strides = [1, 1]} : vector<8x8xf32> to vector<8x1xf32>
    %109 = vector.extract_strided_slice %103 {offsets = [0, 0], sizes = [1, 256], strides = [1, 1]} : vector<8x256xf32> to vector<1x256xf32>
    %110 = vector.broadcast %108 : vector<8x1xf32> to vector<8x256xf32>
    %111 = vector.broadcast %109 : vector<1x256xf32> to vector<8x256xf32>
    %112 = arith.mulf %110, %111 : vector<8x256xf32>
    %113 = arith.addf %107, %112 : vector<8x256xf32>
    %114 = vector.extract_strided_slice %2 {offsets = [0, 1], sizes = [8, 1], strides = [1, 1]} : vector<8x8xf32> to vector<8x1xf32>
    %115 = vector.extract_strided_slice %103 {offsets = [1, 0], sizes = [1, 256], strides = [1, 1]} : vector<8x256xf32> to vector<1x256xf32>
    %116 = vector.broadcast %114 : vector<8x1xf32> to vector<8x256xf32>
    %117 = vector.broadcast %115 : vector<1x256xf32> to vector<8x256xf32>
    %118 = arith.mulf %116, %117 : vector<8x256xf32>
    %119 = arith.addf %113, %118 : vector<8x256xf32>
    %120 = vector.extract_strided_slice %2 {offsets = [0, 2], sizes = [8, 1], strides = [1, 1]} : vector<8x8xf32> to vector<8x1xf32>
    %121 = vector.extract_strided_slice %103 {offsets = [2, 0], sizes = [1, 256], strides = [1, 1]} : vector<8x256xf32> to vector<1x256xf32>
    %122 = vector.broadcast %120 : vector<8x1xf32> to vector<8x256xf32>
    %123 = vector.broadcast %121 : vector<1x256xf32> to vector<8x256xf32>
    %124 = arith.mulf %122, %123 : vector<8x256xf32>
    %125 = arith.addf %119, %124 : vector<8x256xf32>
    %126 = vector.extract_strided_slice %2 {offsets = [0, 3], sizes = [8, 1], strides = [1, 1]} : vector<8x8xf32> to vector<8x1xf32>
    %127 = vector.extract_strided_slice %103 {offsets = [3, 0], sizes = [1, 256], strides = [1, 1]} : vector<8x256xf32> to vector<1x256xf32>
    %128 = vector.broadcast %126 : vector<8x1xf32> to vector<8x256xf32>
    %129 = vector.broadcast %127 : vector<1x256xf32> to vector<8x256xf32>
    %130 = arith.mulf %128, %129 : vector<8x256xf32>
    %131 = arith.addf %125, %130 : vector<8x256xf32>
    %132 = vector.extract_strided_slice %2 {offsets = [0, 4], sizes = [8, 1], strides = [1, 1]} : vector<8x8xf32> to vector<8x1xf32>
    %133 = vector.extract_strided_slice %103 {offsets = [4, 0], sizes = [1, 256], strides = [1, 1]} : vector<8x256xf32> to vector<1x256xf32>
    %134 = vector.broadcast %132 : vector<8x1xf32> to vector<8x256xf32>
    %135 = vector.broadcast %133 : vector<1x256xf32> to vector<8x256xf32>
    %136 = arith.mulf %134, %135 : vector<8x256xf32>
    %137 = arith.addf %131, %136 : vector<8x256xf32>
    %138 = vector.extract_strided_slice %2 {offsets = [0, 5], sizes = [8, 1], strides = [1, 1]} : vector<8x8xf32> to vector<8x1xf32>
    %139 = vector.extract_strided_slice %103 {offsets = [5, 0], sizes = [1, 256], strides = [1, 1]} : vector<8x256xf32> to vector<1x256xf32>
    %140 = vector.broadcast %138 : vector<8x1xf32> to vector<8x256xf32>
    %141 = vector.broadcast %139 : vector<1x256xf32> to vector<8x256xf32>
    %142 = arith.mulf %140, %141 : vector<8x256xf32>
    %143 = arith.addf %137, %142 : vector<8x256xf32>
    %144 = vector.extract_strided_slice %2 {offsets = [0, 6], sizes = [8, 1], strides = [1, 1]} : vector<8x8xf32> to vector<8x1xf32>
    %145 = vector.extract_strided_slice %103 {offsets = [6, 0], sizes = [1, 256], strides = [1, 1]} : vector<8x256xf32> to vector<1x256xf32>
    %146 = vector.broadcast %144 : vector<8x1xf32> to vector<8x256xf32>
    %147 = vector.broadcast %145 : vector<1x256xf32> to vector<8x256xf32>
    %148 = arith.mulf %146, %147 : vector<8x256xf32>
    %149 = arith.addf %143, %148 : vector<8x256xf32>
    %150 = vector.extract_strided_slice %2 {offsets = [0, 7], sizes = [8, 1], strides = [1, 1]} : vector<8x8xf32> to vector<8x1xf32>
    %151 = vector.extract_strided_slice %103 {offsets = [7, 0], sizes = [1, 256], strides = [1, 1]} : vector<8x256xf32> to vector<1x256xf32>
    %152 = vector.broadcast %150 : vector<8x1xf32> to vector<8x256xf32>
    %153 = vector.broadcast %151 : vector<1x256xf32> to vector<8x256xf32>
    %154 = arith.mulf %152, %153 : vector<8x256xf32>
    %155 = arith.addf %149, %154 : vector<8x256xf32>
    %156 = vector.broadcast %3 : vector<8x1xf32> to vector<8x256xf32>
    %157 = arith.addf %155, %156 : vector<8x256xf32>
    %158 = arith.truncf %157 : vector<8x256xf32> to vector<8x256xbf16>
    %c0_22 = arith.constant 0 : index
    %c0_23 = arith.constant 0 : index
    %c0_24 = arith.constant 0 : index
    %159 = vector.load %arg6[%c0_22, %c0_23, %c0_24] : memref<2x8x256xbf16, #tpu.memory_space<vmem>>, vector<1x8x256xbf16>
    %160 = vector.shape_cast %159 : vector<1x8x256xbf16> to vector<8x256xbf16>
    %161 = vector.shape_cast %158 : vector<8x256xbf16> to vector<1x8x256xbf16>
    tpu.vector_store %arg6[%c0_22, %c0_23, %c0_24], %161 {strides = array<i32>} : memref<2x8x256xbf16, #tpu.memory_space<vmem>>, vector<1x8x256xbf16>,
    %cst_25 = arith.constant 0.000000e+00 : f32
    %162 = vector.broadcast %cst_25 : f32 to vector<8x256xf32>
    %163 = vector.extract_strided_slice %2 {offsets = [0, 0], sizes = [8, 1], strides = [1, 1]} : vector<8x8xf32> to vector<8x1xf32>
    %164 = vector.extract_strided_slice %106 {offsets = [0, 0], sizes = [1, 256], strides = [1, 1]} : vector<8x256xf32> to vector<1x256xf32>
    %165 = vector.broadcast %163 : vector<8x1xf32> to vector<8x256xf32>
    %166 = vector.broadcast %164 : vector<1x256xf32> to vector<8x256xf32>
    %167 = arith.mulf %165, %166 : vector<8x256xf32>
    %168 = arith.addf %162, %167 : vector<8x256xf32>
    %169 = vector.extract_strided_slice %2 {offsets = [0, 1], sizes = [8, 1], strides = [1, 1]} : vector<8x8xf32> to vector<8x1xf32>
    %170 = vector.extract_strided_slice %106 {offsets = [1, 0], sizes = [1, 256], strides = [1, 1]} : vector<8x256xf32> to vector<1x256xf32>
    %171 = vector.broadcast %169 : vector<8x1xf32> to vector<8x256xf32>
    %172 = vector.broadcast %170 : vector<1x256xf32> to vector<8x256xf32>
    %173 = arith.mulf %171, %172 : vector<8x256xf32>
    %174 = arith.addf %168, %173 : vector<8x256xf32>
    %175 = vector.extract_strided_slice %2 {offsets = [0, 2], sizes = [8, 1], strides = [1, 1]} : vector<8x8xf32> to vector<8x1xf32>
    %176 = vector.extract_strided_slice %106 {offsets = [2, 0], sizes = [1, 256], strides = [1, 1]} : vector<8x256xf32> to vector<1x256xf32>
    %177 = vector.broadcast %175 : vector<8x1xf32> to vector<8x256xf32>
    %178 = vector.broadcast %176 : vector<1x256xf32> to vector<8x256xf32>
    %179 = arith.mulf %177, %178 : vector<8x256xf32>
    %180 = arith.addf %174, %179 : vector<8x256xf32>
    %181 = vector.extract_strided_slice %2 {offsets = [0, 3], sizes = [8, 1], strides = [1, 1]} : vector<8x8xf32> to vector<8x1xf32>
    %182 = vector.extract_strided_slice %106 {offsets = [3, 0], sizes = [1, 256], strides = [1, 1]} : vector<8x256xf32> to vector<1x256xf32>
    %183 = vector.broadcast %181 : vector<8x1xf32> to vector<8x256xf32>
    %184 = vector.broadcast %182 : vector<1x256xf32> to vector<8x256xf32>
    %185 = arith.mulf %183, %184 : vector<8x256xf32>
    %186 = arith.addf %180, %185 : vector<8x256xf32>
    %187 = vector.extract_strided_slice %2 {offsets = [0, 4], sizes = [8, 1], strides = [1, 1]} : vector<8x8xf32> to vector<8x1xf32>
    %188 = vector.extract_strided_slice %106 {offsets = [4, 0], sizes = [1, 256], strides = [1, 1]} : vector<8x256xf32> to vector<1x256xf32>
    %189 = vector.broadcast %187 : vector<8x1xf32> to vector<8x256xf32>
    %190 = vector.broadcast %188 : vector<1x256xf32> to vector<8x256xf32>
    %191 = arith.mulf %189, %190 : vector<8x256xf32>
    %192 = arith.addf %186, %191 : vector<8x256xf32>
    %193 = vector.extract_strided_slice %2 {offsets = [0, 5], sizes = [8, 1], strides = [1, 1]} : vector<8x8xf32> to vector<8x1xf32>
    %194 = vector.extract_strided_slice %106 {offsets = [5, 0], sizes = [1, 256], strides = [1, 1]} : vector<8x256xf32> to vector<1x256xf32>
    %195 = vector.broadcast %193 : vector<8x1xf32> to vector<8x256xf32>
    %196 = vector.broadcast %194 : vector<1x256xf32> to vector<8x256xf32>
    %197 = arith.mulf %195, %196 : vector<8x256xf32>
    %198 = arith.addf %192, %197 : vector<8x256xf32>
    %199 = vector.extract_strided_slice %2 {offsets = [0, 6], sizes = [8, 1], strides = [1, 1]} : vector<8x8xf32> to vector<8x1xf32>
    %200 = vector.extract_strided_slice %106 {offsets = [6, 0], sizes = [1, 256], strides = [1, 1]} : vector<8x256xf32> to vector<1x256xf32>
    %201 = vector.broadcast %199 : vector<8x1xf32> to vector<8x256xf32>
    %202 = vector.broadcast %200 : vector<1x256xf32> to vector<8x256xf32>
    %203 = arith.mulf %201, %202 : vector<8x256xf32>
    %204 = arith.addf %198, %203 : vector<8x256xf32>
    %205 = vector.extract_strided_slice %2 {offsets = [0, 7], sizes = [8, 1], strides = [1, 1]} : vector<8x8xf32> to vector<8x1xf32>
    %206 = vector.extract_strided_slice %106 {offsets = [7, 0], sizes = [1, 256], strides = [1, 1]} : vector<8x256xf32> to vector<1x256xf32>
    %207 = vector.broadcast %205 : vector<8x1xf32> to vector<8x256xf32>
    %208 = vector.broadcast %206 : vector<1x256xf32> to vector<8x256xf32>
    %209 = arith.mulf %207, %208 : vector<8x256xf32>
    %210 = arith.addf %204, %209 : vector<8x256xf32>
    %211 = vector.broadcast %3 : vector<8x1xf32> to vector<8x256xf32>
    %212 = arith.addf %210, %211 : vector<8x256xf32>
    %213 = arith.truncf %212 : vector<8x256xf32> to vector<8x256xbf16>
    %c1_26 = arith.constant 1 : index
    %c0_27 = arith.constant 0 : index
    %c0_28 = arith.constant 0 : index
    %214 = vector.load %arg6[%c1_26, %c0_27, %c0_28] : memref<2x8x256xbf16, #tpu.memory_space<vmem>>, vector<1x8x256xbf16>
    %215 = vector.shape_cast %214 : vector<1x8x256xbf16> to vector<8x256xbf16>
    %216 = vector.shape_cast %213 : vector<8x256xbf16> to vector<1x8x256xbf16>
    tpu.vector_store %arg6[%c1_26, %c0_27, %c0_28], %216 {strides = array<i32>} : memref<2x8x256xbf16, #tpu.memory_space<vmem>>, vector<1x8x256xbf16>,
    return
  }
  func.func @transform_0(%arg0: i32) -> (i32, i32, i32) {
    %c0_i32 = arith.constant 0 : i32
    %c0_i32_0 = arith.constant 0 : i32
    %c0_i32_1 = arith.constant 0 : i32
    return %arg0, %c0_i32, %c0_i32_0 : i32, i32, i32
  }
  func.func @transform_1(%arg0: i32) -> (i32, i32) {
    %c0_i32 = arith.constant 0 : i32
    %c0_i32_0 = arith.constant 0 : i32
    %c0_i32_1 = arith.constant 0 : i32
    return %c0_i32, %c0_i32_0 : i32, i32
  }
  func.func @transform_2(%arg0: i32) -> (i32, i32) {
    %c0_i32 = arith.constant 0 : i32
    %c0_i32_0 = arith.constant 0 : i32
    %c0_i32_1 = arith.constant 0 : i32
    return %c0_i32, %c0_i32_0 : i32, i32
  }
  func.func @transform_3(%arg0: i32) -> (i32, i32) {
    %c0_i32 = arith.constant 0 : i32
    %c0_i32_0 = arith.constant 0 : i32
    %c0_i32_1 = arith.constant 0 : i32
    return %c0_i32, %c0_i32_0 : i32, i32
  }
  func.func @transform_4(%arg0: i32) -> (i32, i32) {
    %c0_i32 = arith.constant 0 : i32
    %c0_i32_0 = arith.constant 0 : i32
    %c0_i32_1 = arith.constant 0 : i32
    return %c0_i32, %c0_i32_0 : i32, i32
  }
  func.func @transform_5(%arg0: i32) -> (i32, i32, i32) {
    %c0_i32 = arith.constant 0 : i32
    %c0_i32_0 = arith.constant 0 : i32
    %c0_i32_1 = arith.constant 0 : i32
    return %arg0, %c0_i32, %c0_i32_0 : i32, i32, i32
  }
}

</mosaic_0001>

<bundles_post_ra>
// kernel: sepconv_forward.1
= control target key start
LH: loop header
LB: loop body
LE: loop exit
PB: predicated region body
PF: predicated region fallthrough
CT: control target
= control target key end

     0   :  { %v710_v0 = vmov 1   ;;  %v711_v1 = vmov 0   ;;  %v713_v11 = vmov 2   ;;  %v714_v12 = vmov 4   ;;  %s716_s24 = smov 15   ;;  %s721_s25 = smov 1   ;;  %s1088_s1 = inlined_call_operand.vmem [shape: f32[8,9], index: 1, kind: input, shape index: {}]   ;;  %s1089_s0 = inlined_call_operand.vmem [shape: bf16[2,8,256], index: 0, kind: input, shape index: {}]   ;;  %s1090_s2 = inlined_call_operand.vmem [shape: f32[8,8], index: 2, kind: input, shape index: {}]   ;;  %s1091_s3 = inlined_call_operand.vmem [shape: f32[8,1], index: 3, kind: input, shape index: {}]   ;;  %s1092_s4 = inlined_call_operand.vmem [shape: f32[9,256], index: 4, kind: input, shape index: {}]   ;;  %s1093_s5 = inlined_call_operand.vmem [shape: bf16[2,8,256], index: 5, kind: output, shape index: {}]  }
   0x1   :  { %612 = vset.pattern.permute.xlu1 %v710_v0  ;;  %611 = vset.pattern.permute.xlu0 %v711_v1  ;;  %v20_v2 = vld [vmem:[%s1088_s1] sm:$0xff]  ;;  %v764_v3 = vld [vmem:[%s1089_s0 + $0x8] sm:$0xff]  ;;  %s715_s1 = smov 16   ;;  %v717_v13 = vmov 3   ;;  %v718_v14 = vmov 6   ;;  %v719_v15 = vmov 5   ;;  %v39_v22 = vlaneseq }
   0x2   :  { %v769_v4 = vld [vmem:[%s1089_s0] sm:$0xff]  ;;  %73 = vperm.xlu1 %612, %v20_v2   ;;  %36 = vperm.xlu0 %611, %v20_v2   ;;  %v32_v5 = vunpack.c.l.bf16 %v764_v3  ;;  %v33_v6 = vunpack.c.h.bf16 %v764_v3  ;;  %s712_s0 = smov 17   ;;  %v720_v16 = vmov 7   ;;  %v722_v17 = vmov 8   ;;  %s723_s26 = smov 127   ;;  %v817_v33 = vld [vmem:[%s1092_s4 + $0x8] sm:$0xff] }
   0x3   :  { %v28_v7 = vunpack.c.l.bf16 %v769_v4  ;;  %v29_v8 = vunpack.c.h.bf16 %v769_v4  ;;  %s724_s27 = smov 113   ;;  %s725_s28 = smov 112   ;;  %v25_v18 = vld [vmem:[%s1090_s2] sm:$0xff]  ;;  %v796_v25 = vshrl.u32 %v39_v22, 7  ;;  %v801_v29 = vand.u32 127, %v39_v22 }
   0x4   :  { %v618_v9 = vpack.i.bf16 %v33_v6, %v32_v5  ;;  %s726_s29 = smov 111   ;;  %v26_v19 = vld [vmem:[%s1091_s3] sm:$0xff] }
   0x5   :  { %v613_v10 = vpack.i.bf16 %v29_v8, %v28_v7  ;;  %v799_v28 = vsub.s32 1, %v796_v25  ;;  %v806_v30 = vld [vmem:[%s1092_s4] sm:$0xff]  ;;  %v809_v31 = vsub.s32 0, %v796_v25  ;;  %v812_v32 = vsub.s32 2, %v796_v25 }
   0x6   :  { %619 = vrot.lane.b32.xlu1 %v618_v9, %s712_s0  ;;  %633 = vset.pattern.permute.xlu0 %v713_v11  ;;  %v820_v35 = vsub.s32 3, %v796_v25  ;;  %v823_v37 = vsub.s32 6, %v796_v25  ;;  %v826_v38 = vsub.s32 5, %v796_v25  ;;  %vm55_vm0 = vcmp.lt.s32.totalorder %v801_v29, 17 }
   0x7   :  { %614 = vrot.lane.b32.xlu0 %v613_v10, %s712_s0  ;;  %645 = vset.pattern.permute.xlu1 %v714_v12  ;;  %v79_v39 = vrot.slane %v806_v30, %v799_v28  ;;  %vm90_vm1 = vcmp.lt.s32.totalorder %v801_v29, 16  ;;  %v833_v40 = vsub.s32 7, %v796_v25  ;;  %v83_v41 = vrot.slane %v817_v33, %v799_v28 }
   0x8   :  { %v42_v42 = vrot.slane %v806_v30, %v809_v31  ;;  %v46_v43 = vrot.slane %v817_v33, %v809_v31  ;;  %v114_v44 = vrot.slane %v806_v30, %v812_v32  ;;  %v118_v45 = vrot.slane %v817_v33, %v812_v32 }
   0x9   :  { %vm125_vm2 = vcmp.lt.s32.totalorder %v801_v29, 15  ;;  %v149_v47 = vrot.slane %v806_v30, %v820_v35  ;;  %v153_v48 = vrot.slane %v817_v33, %v820_v35  ;;  %v231_v50 = vrot.slane %v806_v30, %v823_v37 }
   0xa   :  { %629 = vrot.lane.b32.xlu1 %v618_v9, %s715_s1  ;;  %v235_v51 = vrot.slane %v817_v33, %v823_v37  ;;  %v196_v52 = vrot.slane %v806_v30, %v826_v38  ;;  %v200_v53 = vrot.slane %v817_v33, %v826_v38  ;;  %v266_v56 = vrot.slane %v806_v30, %v833_v40 }
   0xb   :  { %624 = vrot.lane.b32.xlu0 %v613_v10, %s715_s1  ;;  %v270_v57 = vrot.slane %v817_v33, %v833_v40  ;;  %vm160_vm3 = vcmp.lt.s32.totalorder %v801_v29, 1  ;;  %vm207_vm4 = vcmp.lt.s32.totalorder %v801_v29, 127  ;;  %vm242_vm5 = vcmp.lt.s32.totalorder %v801_v29, 113 }
   0xc   :  { %vm277_vm6 = vcmp.lt.s32.totalorder %v801_v29, 112  ;;  %vm312_vm7 = vcmp.lt.s32.totalorder %v801_v29, 111 }
   0xe   :  { %635 = vrot.lane.b32.xlu1 %v613_v10, %s716_s24 }
   0xf   :  { %108 = vperm.xlu0 %633, %v20_v2  }
  0x12   :  { %640 = vrot.lane.b32.xlu1 %v618_v9, %s716_s24 }
  0x13   :  { %644 = vset.pattern.permute.xlu0 %v717_v13 }
  0x14   :  { %143 = vperm.xlu0 %644, %v20_v2  }
  0x16   :  { %178 = vperm.xlu1 %645, %v20_v2  }
  0x18   :  { %647 = vset.pattern.permute.xlu0 %v718_v14 }
  0x19   :  { %225 = vperm.xlu0 %647, %v20_v2  }
  0x1a   :  { %646 = vset.pattern.permute.xlu1 %v719_v15 }
  0x1b   :  { %190 = vperm.xlu1 %646, %v20_v2  }
  0x1d   :  { %658 = vset.pattern.permute.xlu0 %v720_v16 }
  0x1e   :  { %260 = vperm.xlu0 %658, %v20_v2  }
  0x1f   :  { %649 = vrot.lane.b32.xlu1 %v613_v10, %s721_s25 }
  0x20   :  { %659 = vset.pattern.permute.xlu1 %v722_v17 }
  0x22   :  { %666 = vrot.lane.b32.xlu0 %v618_v9, %s723_s26 }
  0x23   :  { %701 = vset.pattern.permute.xlu0 %v710_v0  ;;  %654 = vrot.lane.b32.xlu1 %v618_v9, %s721_s25 }
  0x26   :  { %676 = vrot.lane.b32.xlu0 %v618_v9, %s724_s27 }
  0x27   :  { %295 = vperm.xlu1 %659, %v20_v2  }
  0x2a   :  { %686 = vrot.lane.b32.xlu0 %v618_v9, %s725_s28 }
  0x2b   :  { %661 = vrot.lane.b32.xlu1 %v613_v10, %s723_s26 }
  0x2c   :  { %700 = vset.pattern.permute.xlu1 %v711_v1 }
  0x2e   :  { %696 = vrot.lane.b32.xlu0 %v618_v9, %s726_s29 }
  0x2f   :  { %671 = vrot.lane.b32.xlu1 %v613_v10, %s724_s27 }
  0x32   :  { %347 = vperm.xlu0 %701, %v25_v18  }
  0x33   :  { %681 = vrot.lane.b32.xlu1 %v613_v10, %s725_s28 }
  0x36   :  { %704 = vset.pattern.permute.xlu0 %v714_v12 }
  0x37   :  { %395 = vperm.xlu0 %704, %v25_v18   ;;  %691 = vrot.lane.b32.xlu1 %v613_v10, %s726_s29 }
  0x3b   :  { %707 = vset.pattern.permute.xlu0 %v720_v16  ;;  %331 = vperm.xlu1 %700, %v25_v18  }
  0x3c   :  { %443 = vperm.xlu0 %707, %v25_v18  }
  0x3f   :  { %702 = vset.pattern.permute.xlu1 %v713_v11 }
  0x40   :  { %709 = vset.pattern.permute.xlu0 %v711_v1  ;;  %363 = vperm.xlu1 %702, %v25_v18  }
  0x44   :  { %703 = vset.pattern.permute.xlu1 %v717_v13 }
  0x45   :  { %379 = vperm.xlu1 %703, %v25_v18  }
  0x49   :  { %705 = vset.pattern.permute.xlu1 %v719_v15 }
  0x4a   :  { %411 = vperm.xlu1 %705, %v25_v18  }
  0x4e   :  { %706 = vset.pattern.permute.xlu1 %v718_v14 }
  0x4f   :  { %427 = vperm.xlu1 %706, %v25_v18  }
  0x53   :  { %708 = vset.pattern.permute.xlu1 %v711_v1 }
  0x54   :  { %460 = vperm.xlu1 %708, %v26_v19  }
  0x81   :  { %v74_v20 = vpop.permute.xlu1 %73  ;;  %v37_v21 = vpop.permute.xlu0 %36 }
  0x82   :  { %v84_v58 = vmul.f32 %v79_v39, %v74_v20  ;;  %v85_v59 = vmul.f32 %v83_v41, %v74_v20  ;;  %v47_v9 = vmul.f32 %v42_v42, %v37_v21  ;;  %v48_v10 = vmul.f32 %v46_v43, %v37_v21 }
  0x85   :  { %v792_v23 = vpop.permute.xlu1 %619  ;;  %v794_v24 = vpop.permute.xlu0 %614 }
  0x86   :  { %v617_v62 = vunpack.i.h.bf16 %v794_v24  ;;  %v616_v63 = vunpack.i.l.bf16 %v794_v24  ;;  %v622_v11 = vunpack.i.h.bf16 %v792_v23  ;;  %v621_v12 = vunpack.i.l.bf16 %v792_v23 }
  0x88   :  { %v56_v22 = vsel %vm55_vm0, %v616_v63, %v617_v62  ;;  %v57_v23 = vsel %vm55_vm0, %v617_v62, %v616_v63 }
  0x89   :  { %v630_v26 = vpop.permute.xlu1 %629  ;;  %v625_v27 = vpop.permute.xlu0 %624 }
  0x8a   :  { %v627_v54 = vunpack.i.h.bf16 %v625_v27  ;;  %v626_v55 = vunpack.i.l.bf16 %v625_v27  ;;  %v632_v60 = vunpack.i.h.bf16 %v630_v26  ;;  %v631_v61 = vunpack.i.l.bf16 %v630_v26 }
  0x8b   :  { %v66_v27 = vsel %vm55_vm0, %v621_v12, %v622_v11 }
  0x8c   :  { %v91_v13 = vsel %vm90_vm1, %v626_v55, %v627_v54  ;;  %v92_v14 = vsel %vm90_vm1, %v627_v54, %v626_v55  ;;  %v101_v18 = vsel %vm90_vm1, %v631_v61, %v632_v60  ;;  %v102_v19 = vsel %vm90_vm1, %v632_v60, %v631_v61 }
  0x8d   :  { %v636_v34 = vpop.permute.xlu1 %635  ;;  %v93_v39 = vmul.f32 %v92_v14, %v84_v58  ;;  %v103_v42 = vmul.f32 %v102_v19, %v84_v58  ;;  %v104_v43 = vmul.f32 %v101_v18, %v85_v59  ;;  %v59_v54 = vmul.f32 %v56_v22, %v48_v10 }
  0x8e   :  { %v109_v36 = vpop.permute.xlu0 %108  ;;  %v638_v0 = vunpack.i.h.bf16 %v636_v34  ;;  %v637_v1 = vunpack.i.l.bf16 %v636_v34  ;;  %v67_v34 = vsel %vm55_vm0, %v622_v11, %v621_v12  ;;  %v69_v63 = vmul.f32 %v66_v27, %v48_v10 }
  0x8f   :  { %v119_v20 = vmul.f32 %v114_v44, %v109_v36  ;;  %v120_v21 = vmul.f32 %v118_v45, %v109_v36  ;;  %v94_v36 = vmul.f32 %v91_v13, %v85_v59  ;;  %v68_v62 = vmul.f32 %v67_v34, %v47_v9 }
  0x90   :  { %v126_v24 = vsel %vm125_vm2, %v637_v1, %v638_v0  ;;  %v127_v26 = vsel %vm125_vm2, %v638_v0, %v637_v1  ;;  %v106_v13 = vadd.f32 %v104_v43, %v69_v63 }
  0x91   :  { %v641_v46 = vpop.permute.xlu1 %640  ;;  %v128_v55 = vmul.f32 %v127_v26, %v119_v20  ;;  %v129_v60 = vmul.f32 %v126_v24, %v120_v21  ;;  %v96_v58 = vadd.f32 %v94_v36, %v59_v54  ;;  %v105_v12 = vadd.f32 %v103_v42, %v68_v62 }
  0x92   :  { %v643_v15 = vunpack.i.h.bf16 %v641_v46  ;;  %v642_v16 = vunpack.i.l.bf16 %v641_v46  ;;  %v58_v46 = vmul.f32 %v57_v23, %v47_v9 }
  0x93   :  { %v850_v49 = vpop.permute.xlu0 %143  ;;  %v131_v18 = vadd.f32 %v129_v60, %v96_v58 }
  0x94   :  { %v136_v44 = vsel %vm125_vm2, %v642_v16, %v643_v15  ;;  %v137_v45 = vsel %vm125_vm2, %v643_v15, %v642_v16  ;;  %v95_v0 = vadd.f32 %v93_v39, %v58_v46  ;;  %v154_v9 = vmul.f32 %v149_v47, %v850_v49 }
  0x95   :  { %v866_v2 = vpop.permute.xlu1 %178  ;;  %v138_v59 = vmul.f32 %v137_v45, %v119_v20  ;;  %v139_v1 = vmul.f32 %v136_v44, %v120_v21  ;;  %v155_v10 = vmul.f32 %v153_v48, %v850_v49 }
  0x96   :  { %v130_v16 = vadd.f32 %v128_v55, %v95_v0  ;;  %v185_v20 = vmul.f32 %v866_v2, %v32_v5  ;;  %v186_v21 = vmul.f32 %v866_v2, %v33_v6 }
  0x97   :  { %v140_v23 = vadd.f32 %v138_v59, %v105_v12  ;;  %v141_v24 = vadd.f32 %v139_v1, %v106_v13 }
  0x98   :  { %v226_v17 = vpop.permute.xlu0 %225 }
  0x99   :  { %v919_v27 = vmul.f32 %v231_v50, %v226_v17  ;;  %v924_v3 = vmul.f32 %v235_v51, %v226_v17 }
  0x9a   :  { %v191_v41 = vpop.permute.xlu1 %190 }
  0x9b   :  { %v929_v34 = vmul.f32 %v196_v52, %v191_v41  ;;  %v934_v39 = vmul.f32 %v200_v53, %v191_v41 }
  0x9d   :  { %v261_v61 = vpop.permute.xlu0 %260 }
  0x9e   :  { %v650_v11 = vpop.permute.xlu1 %649  ;;  %v948_v54 = vmul.f32 %v266_v56, %v261_v61  ;;  %v953_v55 = vmul.f32 %v270_v57, %v261_v61 }
  0x9f   :  { %v652_v14 = vunpack.i.h.bf16 %v650_v11  ;;  %v651_v15 = vunpack.i.l.bf16 %v650_v11 }
  0xa1   :  { %v667_v19 = vpop.permute.xlu0 %666  ;;  %v161_v22 = vsel %vm160_vm3, %v651_v15, %v652_v14  ;;  %v162_v47 = vsel %vm160_vm3, %v652_v14, %v651_v15  ;;  %v587_v14 = vld [vmem:[%s1092_s4 + $0x10] ss:$0 sm:$0xff]  ;;  %v588_v15 = vld [vmem:[%s1092_s4 + $0x18] ss:$0 sm:$0xff] }
  0xa2   :  { %v669_v48 = vunpack.i.h.bf16 %v667_v19  ;;  %v668_v49 = vunpack.i.l.bf16 %v667_v19  ;;  %v655_v26 = vpop.permute.xlu1 %654  ;;  %v163_v36 = vmul.f32 %v162_v47, %v154_v9  ;;  %v164_v50 = vmul.f32 %v161_v22, %v155_v10 }
  0xa3   :  { %v657_v5 = vunpack.i.h.bf16 %v655_v26  ;;  %v656_v6 = vunpack.i.l.bf16 %v655_v26 }
  0xa4   :  { %v218_v52 = vsel %vm207_vm4, %v668_v49, %v669_v48  ;;  %v219_v53 = vsel %vm207_vm4, %v669_v48, %v668_v49  ;;  %v165_v63 = vadd.f32 %v163_v36, %v130_v16  ;;  %v166_v0 = vadd.f32 %v164_v50, %v131_v18 }
  0xa5   :  { %v677_v42 = vpop.permute.xlu0 %676  ;;  %v171_v51 = vsel %vm160_vm3, %v656_v6, %v657_v5  ;;  %v172_v17 = vsel %vm160_vm3, %v657_v5, %v656_v6  ;;  %v220_v30 = vmul.f32 %v218_v52, %v929_v34  ;;  %v221_v56 = vmul.f32 %v219_v53, %v934_v39 }
  0xa6   :  { %v679_v43 = vunpack.i.h.bf16 %v677_v42  ;;  %v678_v44 = vunpack.i.l.bf16 %v677_v42  ;;  %v173_v41 = vmul.f32 %v172_v17, %v154_v9  ;;  %v174_v45 = vmul.f32 %v171_v51, %v155_v10  ;;  %v296_v46 = vpop.permute.xlu1 %295 }
  0xa7   :  { %v307_v48 = vmul.f32 %v588_v15, %v296_v46  ;;  %v181_v52 = vmul.f32 %v866_v2, %v28_v7  ;;  %v182_v53 = vmul.f32 %v866_v2, %v29_v8 }
  0xa8   :  { %v253_v60 = vsel %vm242_vm5, %v678_v44, %v679_v43  ;;  %v254_v62 = vsel %vm242_vm5, %v679_v43, %v678_v44  ;;  %v175_v58 = vadd.f32 %v173_v41, %v140_v23  ;;  %v176_v59 = vadd.f32 %v174_v45, %v141_v24 }
  0xa9   :  { %v687_v1 = vpop.permute.xlu0 %686  ;;  %v255_v61 = vmul.f32 %v253_v60, %v919_v27  ;;  %v256_v13 = vmul.f32 %v254_v62, %v924_v3  ;;  %v306_v24 = vmul.f32 %v587_v14, %v296_v46  ;;  %v183_v7 = vadd.f32 %v181_v52, %v165_v63 }
  0xaa   :  { %v689_v11 = vunpack.i.h.bf16 %v687_v1  ;;  %v688_v12 = vunpack.i.l.bf16 %v687_v1  ;;  %v187_v33 = vadd.f32 %v185_v20, %v175_v58  ;;  %v188_v57 = vadd.f32 %v186_v21, %v176_v59  ;;  %v662_v16 = vpop.permute.xlu1 %661 }
  0xab   :  { %v664_v10 = vunpack.i.h.bf16 %v662_v16  ;;  %v663_v19 = vunpack.i.l.bf16 %v662_v16  ;;  %v1008_v14 = vsub.s32 4, %v796_v25 }
  0xac   :  { %v288_v18 = vsel %vm277_vm6, %v688_v12, %v689_v11  ;;  %v289_v9 = vsel %vm277_vm6, %v689_v11, %v688_v12  ;;  %v222_v20 = vadd.f32 %v220_v30, %v187_v33  ;;  %v223_v21 = vadd.f32 %v221_v56, %v188_v57 }
  0xad   :  { %v290_v22 = vmul.f32 %v288_v18, %v948_v54  ;;  %v291_v47 = vmul.f32 %v289_v9, %v953_v55  ;;  %v697_v23 = vpop.permute.xlu0 %696  ;;  %v208_v36 = vsel %vm207_vm4, %v663_v19, %v664_v10  ;;  %v209_v50 = vsel %vm207_vm4, %v664_v10, %v663_v19 }
  0xae   :  { %v699_v49 = vunpack.i.h.bf16 %v697_v23  ;;  %v698_v26 = vunpack.i.l.bf16 %v697_v23  ;;  %v257_v5 = vadd.f32 %v255_v61, %v222_v20  ;;  %v258_v6 = vadd.f32 %v256_v13, %v223_v21  ;;  %v672_v42 = vpop.permute.xlu1 %671 }
  0xaf   :  { %v674_v43 = vunpack.i.h.bf16 %v672_v42  ;;  %v673_v44 = vunpack.i.l.bf16 %v672_v42  ;;  %v210_v59 = vmul.f32 %v208_v36, %v929_v34  ;;  %v211_v1 = vmul.f32 %v209_v50, %v934_v39 }
  0xb0   :  { %v323_v51 = vsel %vm312_vm7, %v698_v26, %v699_v49  ;;  %v324_v17 = vsel %vm312_vm7, %v699_v49, %v698_v26  ;;  %v292_v41 = vadd.f32 %v290_v22, %v257_v5  ;;  %v293_v45 = vadd.f32 %v291_v47, %v258_v6 }
  0xb1   :  { %v325_v46 = vmul.f32 %v323_v51, %v306_v24  ;;  %v326_v60 = vmul.f32 %v324_v17, %v307_v48  ;;  %v243_v62 = vsel %vm242_vm5, %v673_v44, %v674_v43  ;;  %v244_v58 = vsel %vm242_vm5, %v674_v43, %v673_v44  ;;  %v348_v26 = vpop.permute.xlu0 %347 }
  0xb2   :  { %v682_v30 = vpop.permute.xlu1 %681  ;;  %v184_v56 = vadd.f32 %v182_v53, %v166_v0  ;;  %v245_v12 = vmul.f32 %v243_v62, %v919_v27  ;;  %v246_v33 = vmul.f32 %v244_v58, %v924_v3  ;;  %v212_v39 = vadd.f32 %v210_v59, %v183_v7 }
  0xb3   :  { %v684_v4 = vunpack.i.h.bf16 %v682_v30  ;;  %v683_v11 = vunpack.i.l.bf16 %v682_v30  ;;  %v995_v8 = vadd.f32 %v325_v46, %v292_v41  ;;  %v997_v2 = vadd.f32 %v326_v60, %v293_v45 }
  0xb4   :  { %v213_v61 = vadd.f32 %v211_v1, %v184_v56  ;;  %v247_v16 = vadd.f32 %v245_v12, %v212_v39 }
  0xb5   :  { %v278_v57 = vsel %vm277_vm6, %v683_v11, %v684_v4  ;;  %v279_v34 = vsel %vm277_vm6, %v684_v4, %v683_v11  ;;  %v489_v18 = vrot.slane %v995_v8, %v799_v28  ;;  %v493_v9 = vrot.slane %v997_v2, %v799_v28 }
  0xb6   :  { %v280_v63 = vmul.f32 %v278_v57, %v948_v54  ;;  %v281_v0 = vmul.f32 %v279_v34, %v953_v55  ;;  %v692_v13 = vpop.permute.xlu1 %691  ;;  %v248_v3 = vadd.f32 %v246_v33, %v213_v61  ;;  %v477_v25 = vrot.slane %v995_v8, %v809_v31  ;;  %v396_v12 = vpop.permute.xlu0 %395 }
  0xb7   :  { %v694_v15 = vunpack.i.h.bf16 %v692_v13  ;;  %v693_v27 = vunpack.i.l.bf16 %v692_v13  ;;  %v481_v55 = vrot.slane %v997_v2, %v809_v31  ;;  %v525_v5 = vrot.slane %v995_v8, %v1008_v14 }
  0xb8   :  { %v282_v19 = vadd.f32 %v280_v63, %v247_v16  ;;  %v283_v20 = vadd.f32 %v281_v0, %v248_v3  ;;  %v529_v29 = vrot.slane %v997_v2, %v1008_v14  ;;  %v494_v50 = vmul.f32 %v489_v18, %v348_v26 }
  0xb9   :  { %v313_v10 = vsel %vm312_vm7, %v693_v27, %v694_v15  ;;  %v314_v54 = vsel %vm312_vm7, %v694_v15, %v693_v27  ;;  %v495_v42 = vmul.f32 %v493_v9, %v348_v26  ;;  %v513_v30 = vrot.slane %v995_v8, %v820_v35 }
  0xba   :  { %v315_v21 = vmul.f32 %v313_v10, %v306_v24  ;;  %v316_v22 = vmul.f32 %v314_v54, %v307_v48  ;;  %v332_v47 = vpop.permute.xlu1 %331  ;;  %v501_v24 = vrot.slane %v995_v8, %v812_v32  ;;  %v505_v48 = vrot.slane %v997_v2, %v812_v32 }
  0xbb   :  { %v482_v23 = vmul.f32 %v477_v25, %v332_v47  ;;  %v483_v49 = vmul.f32 %v481_v55, %v332_v47  ;;  %v530_v18 = vmul.f32 %v525_v5, %v396_v12  ;;  %v531_v9 = vmul.f32 %v529_v29, %v396_v12 }
  0xbc   :  { %v1026_v6 = vadd.f32 %v315_v21, %v282_v19  ;;  %v1028_v36 = vadd.f32 %v316_v22, %v283_v20  ;;  %v537_v21 = vrot.slane %v995_v8, %v826_v38  ;;  %v541_v22 = vrot.slane %v997_v2, %v826_v38 }
  0xbd   :  { %v496_v52 = vadd.f32 %v494_v50, %v482_v23  ;;  %v497_v53 = vadd.f32 %v495_v42, %v483_v49 }
  0xbe   :  { %v337_v51 = vrot.slane %v1026_v6, %v809_v31  ;;  %v341_v17 = vrot.slane %v1028_v36, %v809_v31  ;;  %v353_v43 = vrot.slane %v1026_v6, %v799_v28  ;;  %v357_v44 = vrot.slane %v1028_v36, %v799_v28 }
  0xbf   :  { %v364_v41 = vpop.permute.xlu1 %363  ;;  %v369_v45 = vrot.slane %v1026_v6, %v812_v32  ;;  %v373_v46 = vrot.slane %v1028_v36, %v812_v32  ;;  %v517_v28 = vrot.slane %v997_v2, %v820_v35  ;;  %v385_v32 = vrot.slane %v1026_v6, %v820_v35 }
  0xc0   :  { %v342_v60 = vmul.f32 %v337_v51, %v332_v47  ;;  %v343_v62 = vmul.f32 %v341_v17, %v332_v47  ;;  %v358_v58 = vmul.f32 %v353_v43, %v348_v26  ;;  %v359_v59 = vmul.f32 %v357_v44, %v348_v26  ;;  %v444_v43 = vpop.permute.xlu0 %443 }
  0xc1   :  { %v374_v31 = vmul.f32 %v369_v45, %v364_v41  ;;  %v375_v1 = vmul.f32 %v373_v46, %v364_v41  ;;  %v506_v4 = vmul.f32 %v501_v24, %v364_v41  ;;  %v507_v11 = vmul.f32 %v505_v48, %v364_v41 }
  0xc2   :  { %v360_v7 = vadd.f32 %v358_v58, %v342_v60  ;;  %v361_v56 = vadd.f32 %v359_v59, %v343_v62  ;;  %v389_v33 = vrot.slane %v1028_v36, %v820_v35  ;;  %v401_v57 = vrot.slane %v1026_v6, %v1008_v14 }
  0xc3   :  { %v405_v34 = vrot.slane %v1028_v36, %v1008_v14  ;;  %v508_v63 = vadd.f32 %v506_v4, %v496_v52  ;;  %v509_v0 = vadd.f32 %v507_v11, %v497_v53  ;;  %v417_v14 = vrot.slane %v1026_v6, %v826_v38 }
  0xc4   :  { %v376_v39 = vadd.f32 %v374_v31, %v360_v7  ;;  %v377_v61 = vadd.f32 %v375_v1, %v361_v56  ;;  %v380_v13 = vpop.permute.xlu1 %379  ;;  %v406_v10 = vmul.f32 %v401_v57, %v396_v12  ;;  %v421_v20 = vrot.slane %v1028_v36, %v826_v38 }
  0xc5   :  { %v390_v15 = vmul.f32 %v385_v32, %v380_v13  ;;  %v391_v27 = vmul.f32 %v389_v33, %v380_v13  ;;  %v518_v16 = vmul.f32 %v513_v30, %v380_v13  ;;  %v519_v3 = vmul.f32 %v517_v28, %v380_v13 }
  0xc6   :  { %v407_v54 = vmul.f32 %v405_v34, %v396_v12  ;;  %v449_v48 = vrot.slane %v1026_v6, %v833_v40  ;;  %v453_v51 = vrot.slane %v1028_v36, %v833_v40  ;;  %v561_v17 = vrot.slane %v995_v8, %v833_v40 }
  0xc7   :  { %v392_v35 = vadd.f32 %v390_v15, %v376_v39  ;;  %v393_v25 = vadd.f32 %v391_v27, %v377_v61  ;;  %v520_v55 = vadd.f32 %v518_v16, %v508_v63  ;;  %v521_v19 = vadd.f32 %v519_v3, %v509_v0 }
  0xc8   :  { %v565_v38 = vrot.slane %v997_v2, %v833_v40  ;;  %v433_v44 = vrot.slane %v1026_v6, %v823_v37  ;;  %v437_v52 = vrot.slane %v1028_v36, %v823_v37  ;;  %v549_v53 = vrot.slane %v995_v8, %v823_v37 }
  0xc9   :  { %v412_v47 = vpop.permute.xlu1 %411  ;;  %v408_v23 = vadd.f32 %v406_v10, %v392_v35  ;;  %v409_v49 = vadd.f32 %v407_v54, %v393_v25  ;;  %v532_v26 = vadd.f32 %v530_v18, %v520_v55  ;;  %v533_v5 = vadd.f32 %v531_v9, %v521_v19 }
  0xca   :  { %v422_v29 = vmul.f32 %v417_v14, %v412_v47  ;;  %v423_v50 = vmul.f32 %v421_v20, %v412_v47  ;;  %v542_v42 = vmul.f32 %v537_v21, %v412_v47  ;;  %v543_v24 = vmul.f32 %v541_v22, %v412_v47 }
  0xcb   :  { %v553_v41 = vrot.slane %v997_v2, %v823_v37  ;;  %v454_v30 = vmul.f32 %v449_v48, %v444_v43  ;;  %v455_v6 = vmul.f32 %v453_v51, %v444_v43  ;;  %v566_v28 = vmul.f32 %v561_v17, %v444_v43 }
  0xcc   :  { %v424_v45 = vadd.f32 %v422_v29, %v408_v23  ;;  %v425_v46 = vadd.f32 %v423_v50, %v409_v49  ;;  %v544_v60 = vadd.f32 %v542_v42, %v532_v26  ;;  %v545_v62 = vadd.f32 %v543_v24, %v533_v5 }
  0xcd   :  { %v567_v7 = vmul.f32 %v565_v38, %v444_v43 }
  0xce   :  { %v428_v58 = vpop.permute.xlu1 %427 }
  0xcf   :  { %v438_v59 = vmul.f32 %v433_v44, %v428_v58  ;;  %v439_v40 = vmul.f32 %v437_v52, %v428_v58  ;;  %v554_v31 = vmul.f32 %v549_v53, %v428_v58  ;;  %v555_v1 = vmul.f32 %v553_v41, %v428_v58 }
  0xd1   :  { %v440_v36 = vadd.f32 %v438_v59, %v424_v45  ;;  %v441_v56 = vadd.f32 %v439_v40, %v425_v46  ;;  %v556_v4 = vadd.f32 %v554_v31, %v544_v60  ;;  %v557_v8 = vadd.f32 %v555_v1, %v545_v62 }
  0xd3   :  { %v461_v11 = vpop.permute.xlu1 %460  ;;  %v456_v12 = vadd.f32 %v454_v30, %v440_v36  ;;  %v457_v37 = vadd.f32 %v455_v6, %v441_v56  ;;  %v568_v2 = vadd.f32 %v566_v28, %v556_v4  ;;  %v569_v32 = vadd.f32 %v567_v7, %v557_v8 }
  0xd5   :  { %v463_v33 = vadd.f32 %v461_v11, %v456_v12  ;;  %v464_v57 = vadd.f32 %v461_v11, %v457_v37  ;;  %v570_v34 = vadd.f32 %v568_v2, %v461_v11  ;;  %v571_v39 = vadd.f32 %v569_v32, %v461_v11 }
  0xd7   :  { %v592_v61 = vpack.c.bf16 %v464_v57, %v463_v33  ;;  %v593_v63 = vpack.c.bf16 %v571_v39, %v570_v34 }
  0xd9   :  { %473 = vst [vmem:[%s1093_s5] sm:$0xff] %v592_v61  ;;  %591 = vst [vmem:[%s1093_s5 + $0x8] sm:$0xff] %v593_v63 }

</bundles_post_ra>
